<compile_context>
chip_gen: v5e
topology: v5e:2x2
jax: 0.10.0
libtpu: 0.0.40
codegen_flags: <defaults>
</compile_context>

<pallas_src>
import jax
import jax.numpy as jnp
from jax.experimental import pallas as pl
from jax.experimental.pallas import tpu as pltpu


def _round_up(x, m):
    return ((x + m - 1) // m) * m


def _make_kernel(batch, block_rows):
    """batch = true (unpadded) batch size; block_rows = rows per grid step."""
    inv_b = 1.0 / float(batch)

    def kernel(logits_ref, pk_ref, out_ref, acc_ref):
        pid = pl.program_id(0)

        @pl.when(pid == 0)
        def _init():
            acc_ref[0] = jnp.float32(0.0)

        # Load the logits tile in its native dtype; compute in f32 (v5e has
        # no bf16 VPU/EUP -> bf16 is storage-only).
        x = logits_ref[...].astype(jnp.float32)          # (TB, C)
        tb, c = x.shape

        pk = pk_ref[...]                                  # (TB, 2) int32
        tgt = pk[:, 0:1]                                  # (TB, 1)
        r = pk[:, 1:2]                                    # (TB, 1) in [0, C-2]

        # Random relabel: index r into the classes excluding tgt.
        new_tgt = jnp.where(r < tgt, r, r + 1)            # (TB, 1), != tgt

        # Fused log-softmax + gather:
        #   -logp[t] = lse - shifted[t]   (never materialize full logp)
        m = jnp.max(x, axis=-1, keepdims=True)            # (TB, 1)
        shifted = x - m                                   # (TB, C)
        lse = jnp.log(jnp.sum(jnp.exp(shifted), axis=-1, keepdims=True))

        class_ids = jax.lax.broadcasted_iota(jnp.int32, (tb, c), 1)
        picked = jnp.sum(jnp.where(class_ids == new_tgt, shifted, 0.0),
                         axis=-1, keepdims=True)          # (TB, 1)
        loss_row = lse - picked                           # (TB, 1) per-sample CE

        # Mask rows that are padding (batch padded up to a multiple of TB).
        row_ids = (jax.lax.broadcasted_iota(jnp.int32, (tb, 1), 0)
                   + pid * block_rows)
        loss_row = jnp.where(row_ids < batch, loss_row, 0.0)

        # Accumulate the block's partial sum in SMEM.
        acc_ref[0] = acc_ref[0] + jnp.sum(loss_row)

        # Finalize: single 1/B multiply and a single scalar store.
        @pl.when(pid == pl.num_programs(0) - 1)
        def _finalize():
            out_ref[0, 0] = acc_ref[0] * inv_b

    return kernel


def rand_relabeling_loss(logits, targets, key, num_classes, block_rows=None):
    """logits: [B, C] (f32 or bf16), targets: [B] int. Returns scalar f32."""
    B, C = logits.shape
    assert C == num_classes

    # Random index into the C-1 "other" classes (wrapper-side, like
    # torch.randint in the reference module; keeps the RNG stream identical
    # to the pure-JAX reference).
    r = jax.random.randint(key, (B,), 0, num_classes - 1, dtype=jnp.int32)
    packed = jnp.stack([targets.astype(jnp.int32), r], axis=1)   # (B, 2)

    # Pick a batch tile: biggest multiple of 8 such that a double-buffered
    # logits tile stays <= ~8 MiB (keeps double buffering intact even on
    # v7x's 64 MiB VMEM / 32 MiB scoped default), capped at 512 rows.
    itemsize = jnp.dtype(logits.dtype).itemsize
    if block_rows is None:
        max_rows = max(8, (8 * 1024 * 1024) // (2 * C * itemsize))
        block_rows = min(_round_up(B, 8), (max_rows // 8) * 8, 512)
    block_rows = max(8, (block_rows // 8) * 8)

    nb = -(-B // block_rows)                 # cdiv
    b_pad = nb * block_rows
    if b_pad != B:
        logits = jnp.pad(logits, ((0, b_pad - B), (0, 0)))
        packed = jnp.pad(packed, ((0, b_pad - B), (0, 0)))

    out = pl.pallas_call(
        _make_kernel(B, block_rows),
        out_shape=jax.ShapeDtypeStruct((1, 1), jnp.float32),
        grid=(nb,),
        in_specs=[
            pl.BlockSpec((block_rows, C), lambda i: (i, 0)),   # logits tile
            pl.BlockSpec((block_rows, 2), lambda i: (i, 0)),   # [tgt | r]
        ],
        out_specs=pl.BlockSpec(memory_space=pltpu.MemorySpace.SMEM),
        scratch_shapes=[pltpu.SMEM((1,), jnp.float32)],
        compiler_params=pltpu.CompilerParams(
            dimension_semantics=("arbitrary",)),   # grid axis carries the sum
    )(logits, packed)
    return out[0, 0]


def _reference(logits, targets, key, num_classes):
    """Pure-JAX reference (same relabel construction as the wrapper)."""
    B = targets.shape[0]
    r = jax.random.randint(key, (B,), 0, num_classes - 1, dtype=jnp.int32)
    new_tgt = jnp.where(r < targets.astype(jnp.int32), r, r + 1)
    logp = jax.nn.log_softmax(logits.astype(jnp.float32), axis=-1)
    per_sample = -jnp.take_along_axis(logp, new_tgt[:, None], axis=-1)[:, 0]
    return per_sample.mean()


if __name__ == "__main__":
    key = jax.random.PRNGKey(0)
    k1, k2, k3, k4, k5 = jax.random.split(key, 5)

    # Case 1: f32 logits, batch NOT a multiple of the block size -> exercises
    # padding/masking and a multi-step grid with the SMEM accumulator.
    B, C = 20, 16
    logits = jax.random.normal(k1, (B, C), dtype=jnp.float32)
    targets = jax.random.randint(k2, (B,), 0, C, dtype=jnp.int32)
    loss = rand_relabeling_loss(logits, targets, k3, num_classes=C,
                                block_rows=8)
    loss = jax.block_until_ready(loss)
    ref = _reference(logits, targets, k3, num_classes=C)
    assert jnp.allclose(loss, ref, rtol=1e-5, atol=1e-5), (loss, ref)

    # Case 2: bf16 logits fed in their native dtype (compute stays f32
    # inside the kernel), single grid step.
    B2, C2 = 8, 32
    logits2 = jax.random.normal(k4, (B2, C2), dtype=jnp.float32).astype(
        jnp.bfloat16)
    targets2 = jax.random.randint(k5, (B2,), 0, C2, dtype=jnp.int32)
    loss2 = rand_relabeling_loss(logits2, targets2, k3, num_classes=C2)
    loss2 = jax.block_until_ready(loss2)
    ref2 = _reference(logits2, targets2, k3, num_classes=C2)
    assert jnp.allclose(loss2, ref2, rtol=1e-4, atol=1e-4), (loss2, ref2)

    print("KERNEL_OK")
</pallas_src>

<mosaic_0001>
module attributes {stable_mosaic.version = 11 : i64} {
  func.func @kernel(%arg0: i32, %arg1: memref<8x16xf32, #tpu.memory_space<vmem>>, %arg2: memref<8x2xi32, #tpu.memory_space<vmem>>, %arg3: memref<1x1xf32, #tpu.memory_space<smem>>, %arg4: memref<1xf32, #tpu.memory_space<smem>>) attributes {dimension_semantics = [#tpu.dimension_semantics<arbitrary>], iteration_bounds = array<i64: 3>, scalar_prefetch = 0 : i64, scratch_operands = 1 : i64, tpu.core_type = #tpu.core_type<tc>, window_params = [{transform_indices = @transform_0, window_bounds = array<i64: 8, 16>}, {transform_indices = @transform_1, window_bounds = array<i64: 8, 2>}, {transform_indices = @transform_2, window_bounds = array<i64: 1, 1>}]} {
    %c0_i32 = arith.constant 0 : i32
    %0 = arith.cmpi eq, %arg0, %c0_i32 : i32
    %1 = arith.extui %0 : i1 to i32
    %c0_i32_0 = arith.constant 0 : i32
    %2 = arith.cmpi ne, %1, %c0_i32_0 : i32
    scf.if %2 {
      %cst_12 = arith.constant 0.000000e+00 : f32
      %c0_13 = arith.constant 0 : index
      %45 = memref.load %arg4[%c0_13] : memref<1xf32, #tpu.memory_space<smem>>
      memref.store %cst_12, %arg4[%c0_13] : memref<1xf32, #tpu.memory_space<smem>>
    } else {
    }
    %c0 = arith.constant 0 : index
    %c0_1 = arith.constant 0 : index
    %3 = vector.load %arg1[%c0, %c0_1] : memref<8x16xf32, #tpu.memory_space<vmem>>, vector<8x16xf32>
    %c0_2 = arith.constant 0 : index
    %c0_3 = arith.constant 0 : index
    %4 = vector.load %arg2[%c0_2, %c0_3] : memref<8x2xi32, #tpu.memory_space<vmem>>, vector<8x2xi32>
    %5 = vector.extract_strided_slice %4 {offsets = [0, 0], sizes = [8, 1], strides = [1, 1]} : vector<8x2xi32> to vector<8x1xi32>
    %6 = vector.extract_strided_slice %4 {offsets = [0, 1], sizes = [8, 1], strides = [1, 1]} : vector<8x2xi32> to vector<8x1xi32>
    %7 = arith.cmpi slt, %6, %5 : vector<8x1xi32>
    %c1_i32 = arith.constant 1 : i32
    %8 = vector.broadcast %c1_i32 : i32 to vector<8x1xi32>
    %9 = arith.addi %6, %8 : vector<8x1xi32>
    %10 = arith.select %7, %6, %9 : vector<8x1xi1>, vector<8x1xi32>
    %cst = arith.constant dense<0xFF800000> : vector<8xf32>
    %11 = vector.multi_reduction <maximumf>, %3, %cst [1] : vector<8x16xf32> to vector<8xf32>
    %12 = vector.shape_cast %11 : vector<8xf32> to vector<8x1xf32>
    %13 = vector.broadcast %12 : vector<8x1xf32> to vector<8x16xf32>
    %14 = arith.subf %3, %13 : vector<8x16xf32>
    %15 = math.exp %14 : vector<8x16xf32>
    %cst_4 = arith.constant dense<0.000000e+00> : vector<8xf32>
    %16 = vector.multi_reduction <add>, %15, %cst_4 [1] : vector<8x16xf32> to vector<8xf32>
    %17 = vector.shape_cast %16 : vector<8xf32> to vector<8x1xf32>
    %18 = math.log %17 : vector<8x1xf32>
    %19 = tpu.iota {dimensions = array<i32: 1>} : vector<8x16xi32>
    %20 = vector.broadcast %10 : vector<8x1xi32> to vector<8x16xi32>
    %21 = arith.cmpi eq, %19, %20 : vector<8x16xi32>
    %cst_5 = arith.constant 0.000000e+00 : f32
    %22 = vector.broadcast %cst_5 : f32 to vector<8x16xf32>
    %23 = arith.select %21, %14, %22 : vector<8x16xi1>, vector<8x16xf32>
    %cst_6 = arith.constant dense<0.000000e+00> : vector<8xf32>
    %24 = vector.multi_reduction <add>, %23, %cst_6 [1] : vector<8x16xf32> to vector<8xf32>
    %25 = vector.shape_cast %24 : vector<8xf32> to vector<8x1xf32>
    %26 = arith.subf %18, %25 : vector<8x1xf32>
    %27 = tpu.iota {dimensions = array<i32: 0>} : vector<8x1xi32>
    %c8_i32 = arith.constant 8 : i32
    %28 = arith.muli %arg0, %c8_i32 : i32
    %29 = vector.broadcast %28 : i32 to vector<8x1xi32>
    %30 = arith.addi %27, %29 : vector<8x1xi32>
    %c20_i32 = arith.constant 20 : i32
    %31 = vector.broadcast %c20_i32 : i32 to vector<8x1xi32>
    %32 = arith.cmpi slt, %30, %31 : vector<8x1xi32>
    %cst_7 = arith.constant 0.000000e+00 : f32
    %33 = vector.broadcast %cst_7 : f32 to vector<8x1xf32>
    %34 = arith.select %32, %26, %33 : vector<8x1xi1>, vector<8x1xf32>
    %c0_8 = arith.constant 0 : index
    %35 = memref.load %arg4[%c0_8] : memref<1xf32, #tpu.memory_space<smem>>
    %36 = vector.shape_cast %34 : vector<8x1xf32> to vector<1x8x1xf32>
    %cst_9 = arith.constant dense<0.000000e+00> : vector<1xf32>
    %37 = vector.multi_reduction <add>, %36, %cst_9 [1, 2] : vector<1x8x1xf32> to vector<1xf32>
    %38 = vector.shape_cast %37 : vector<1xf32> to vector<1x1x1xf32>
    %39 = vector.extract %38[0, 0, 0] : f32 from vector<1x1x1xf32>
    %40 = arith.addf %35, %39 : f32
    %c0_10 = arith.constant 0 : index
    %41 = memref.load %arg4[%c0_10] : memref<1xf32, #tpu.memory_space<smem>>
    memref.store %40, %arg4[%c0_10] : memref<1xf32, #tpu.memory_space<smem>>
    %c2_i32 = arith.constant 2 : i32
    %42 = arith.cmpi eq, %arg0, %c2_i32 : i32
    %43 = arith.extui %42 : i1 to i32
    %c0_i32_11 = arith.constant 0 : i32
    %44 = arith.cmpi ne, %43, %c0_i32_11 : i32
    scf.if %44 {
      %c0_12 = arith.constant 0 : index
      %45 = memref.load %arg4[%c0_12] : memref<1xf32, #tpu.memory_space<smem>>
      %cst_13 = arith.constant 5.000000e-02 : f32
      %46 = arith.mulf %45, %cst_13 : f32
      %c0_14 = arith.constant 0 : index
      %c0_15 = arith.constant 0 : index
      %47 = memref.load %arg3[%c0_14, %c0_15] : memref<1x1xf32, #tpu.memory_space<smem>>
      memref.store %46, %arg3[%c0_14, %c0_15] : memref<1x1xf32, #tpu.memory_space<smem>>
    } else {
    }
    return
  }
  func.func @transform_0(%arg0: i32) -> (i32, i32) {
    %c0_i32 = arith.constant 0 : i32
    %c0_i32_0 = arith.constant 0 : i32
    return %arg0, %c0_i32 : i32, i32
  }
  func.func @transform_1(%arg0: i32) -> (i32, i32) {
    %c0_i32 = arith.constant 0 : i32
    %c0_i32_0 = arith.constant 0 : i32
    return %arg0, %c0_i32 : i32, i32
  }
  func.func @transform_2(%arg0: i32) -> (i32, i32) {
    %c0_i32 = arith.constant 0 : i32
    %c0_i32_0 = arith.constant 0 : i32
    %c0_i32_1 = arith.constant 0 : i32
    return %c0_i32, %c0_i32_0 : i32, i32
  }
}

</mosaic_0001>

<bundles_post_ra>
// kernel: tpu_custom_call.1
= control target key start
LH: loop header
LB: loop body
LE: loop exit
PB: predicated region body
PF: predicated region fallthrough
CT: control target
= control target key end

     0   :  { %7 = vsyncpa [#allocation4], 0  ;;  %s359_s9 = smov 0   ;;  %s389_s0 = inlined_call_operand.vmem [shape: f32[24,16], index: 0, kind: input, shape index: {}]   ;;  %s390_s1 = inlined_call_operand.vmem [shape: s32[24,2], index: 1, kind: input, shape index: {}]   ;;  %s391_s2 = inlined_call_operand.hbm [shape: f32[1,1], index: 2, kind: output, shape index: {}]  }
   0x1 LB: > { %s365_s10 = sadd.s32 4294967295, %s338_s9   ;;  %p272_p0 = scmp.ge.s32.totalorder %s338_s9, 1  ;;  %s338_s9 = sphi %s359_s9, %s13_s9  }
   0x2   : > { %p116_p1 = scmp.lt.s32.totalorder %s338_s9, 4 }
   0x4   : > { %p117_p2 = pnand %p272_p0, %p116_p1 }
   0x5   : > { %p136_p3 = scmp.lt.s32.totalorder (!%p117_p2), %s365_s10, 2  ;;  %s340_s16 = smov (!%p117_p2), 1  }
   0x6   : > { %120 = sbr.rel (%p117_p2) target bundleno = 558 (0x22e), region = 28  ;;  %s276_s20 = sshll.u32 (!%p117_p2), %s365_s10, 3 }
   0x7   : > { %p292_p4 = scmp.eq.s32.totalorder (!%p117_p2), %s365_s10, 0  ;;  %s342_s21 = smov (!%p117_p2), 0.0  }
   0x8   : > { %s216_s25 = sshll.u32 (!%p117_p2), %s391_s2, 4  ;;  %p293_p5 = scmp.eq.s32.totalorder (!%p117_p2), %s365_s10, 2  ;;  %s217_s25 = int_to_ptr.hbm [resolvable:$true] %s216_s25 }
   0x9   : > { %s343_s29 = smov (!%p117_p2), [#allocation3]  }
   0xb   : > { %s137_s11 = scalar_select %p136_p3, %s365_s10, 2  ;;  %vm157_vm0 = vcmask 130048   ;;  %v341_v3 = vmov 1   ;;  %v169_v12 = vlaneseq  ;;  %v183_v19 = vstv %s276_s20 }
   0xc   : > { %308 = vset.pattern.permute.xlu1 %v341_v3  ;;  %309 = vset.pattern.permute.xlu0 %v341_v3  ;;  %vm188_vm4 = vcmask 7168   ;;  %285 = sst [smem:[#allocation2]] (%p292_p4), %s342_s21 }
   0xd   : > { %s273_s12 = sshll.u32 %s137_s11, 3  ;;  %v170_v13 = vand.u32 127, %v169_v12  ;;  %v181_v18 = vshrl.u32 %v169_v12, 7  ;;  %s187_s22 = sld [smem:[#allocation2]] }
   0xe   : > { %s143_s15 = scalar_lea.vmem %s390_s1, %s273_s12  ;;  %s139_s19 = scalar_lea.vmem %s389_s0, %s273_s12 }
   0xf   : > { %v151_v0 = vld [vmem:[%s143_s15] sm:$0xff]  ;;  %v184_v21 = vadd.s32 %v183_v19, %v181_v18 }
  0x10   : > { %152 = vrot.lane.b32.xlu0 %v151_v0, %s340_s16  ;;  %v150_v1 = vld [vmem:[%s139_s19] sm:$0xff]  ;;  %v155_v4 = vadd.s32 1, %v151_v0 }
  0x11   : > { %v158_v2 = vsel %vm157_vm0, %v150_v1, -inf  ;;  %vm185_vm3 = vcmp.lt.s32.totalorder %v184_v21, 20 }
  0x3a   : > { %159 = vmax.xlane.f32.xlu0 %v158_v2 }
  0x82   : > { %v153_v5 = vpop.permute.xlu0 %152 }
  0x83   : > { %vm154_vm1 = vcmp.lt.s32.totalorder %v151_v0, %v153_v5 }
  0x84   : > { %v156_v6 = vsel %vm154_vm1, %v151_v0, %v155_v4 }
  0x85   : > { %172 = vperm.xlu1 %308, %v156_v6  }
  0xad   : > { %v160_v7 = vpop.xlane.xlu0 %159 }
  0xae   : > { %v161_v8 = vsub.f32 %v150_v1, %v160_v7 }
  0xb0   : > { %v162_v9 = vmul.f32 1.442695, %v161_v8 }
  0xb2   : > { %310 = vpow2.f32 %v162_v9 }
  0xb8   : > { %v311_v10 = vpop.eup %310 }
  0xb9   : > { %v164_v11 = vsel %vm157_vm0, %v311_v10, 0.0 }
  0xba   : > { %165 = vadd.xlane.f32.xlu1 %v164_v11 }
  0xf7   : > { %v173_v14 = vpop.permute.xlu1 %172 }
  0xf8   : > { %vm174_vm2 = vcmp.eq.s32.totalorder %v170_v13, %v173_v14 }
  0xf9   : > { %v175_v15 = vsel %vm174_vm2, %v161_v8, 0.0 }
  0xfa   : > { %v176_v16 = vsel %vm157_vm0, %v175_v15, 0.0 }
  0xfb   : > { %177 = vadd.xlane.f32.xlu2 %v176_v16 }
 0x12d   : > { %v166_v17 = vpop.xlane.xlu1 %165 }
 0x12e   : > { %312 = vlog2.f32 %v166_v17 }
 0x134   : > { %v313_v20 = vpop.eup %312 }
 0x135   : > { %v168_v22 = vmul.f32 0.6931472, %v313_v20 }
 0x16e   : > { %v178_v23 = vpop.xlane.xlu2 %177 }
 0x16f   : > { %v179_v24 = vsub.f32 %v168_v22, %v178_v23 }
 0x171   : > { %v186_v25 = vsel %vm185_vm3, %v179_v24, 0.0 }
 0x172   : > { %v189_v26 = vsel %vm188_vm4, %v186_v25, 0.0 }
 0x173   : > { %190 = vadd.xlane.f32.xlu2 %v189_v26 }
 0x1e6   : > { %v191_v27 = vpop.xlane.xlu2 %190 }
 0x1e7   : > { %v192_v28 = vrot.slane %v191_v27, 4 }
 0x1e9   : > { %v193_v29 = vadd.f32 %v192_v28, %v191_v27 }
 0x1eb   : > { %v194_v30 = vrot.slane %v193_v29, 2 }
 0x1ed   : > { %v195_v31 = vadd.f32 %v194_v30, %v193_v29 }
 0x1ef   : > { %v196_v32 = vrot.slane %v195_v31, 1 }
 0x1f1   : > { %v197_v33 = vadd.f32 %v196_v32, %v195_v31 }
 0x1f3   : > { %282 = vpush %v197_v33 }
 0x224   : > { %s283_s26 = spop %282 }
 0x225   : > { %s199_s27 = sadd.f32 %s283_s26, %s187_s22 }
 0x227   : > { %201 = sst [smem:[#allocation2]] %s199_s27  ;;  %s207_s28 = smul.f32 0.05, %s199_s27 }
 0x229   : > { %287 = sst [smem:[#allocation3]] (%p293_p5), %s207_s28 }
 0x22a   : > { %289 = dma.smem_to_hbm (%p293_p5), %s343_s29, 16, %s217_s25, [#allocation4]  }
 0x22b   : > { %333 = dma.done.wait (%p293_p5), [#allocation4], 16  }
 0x22c   : > { %335 = vsyncadd (%p293_p5), [#allocation4], 4294967280 }
 0x22d   : > { %225 = sfence }
 0x22e PF: > { %s13_s9 = sadd.s32 1, %s338_s9  }
 0x22f   : > { %p10_p6 = scmp.ge.s32.totalorder %s13_s9, 5  }
 0x231   :  { %12 = sbr.rel (!%p10_p6) target bundleno = 1 (0x1), region = 69 }
 0x236   :  { %231 = vsyncpa [#allocation4], 1 }
 0x237   :  { %233 = vsyncpa [#allocation4 + $0x1], 1 }

</bundles_post_ra>
